<compile_context>
chip_gen: v7x
topology: tpu7x:2x2x1
jax: 0.10.0
libtpu: 0.0.40
codegen_flags: <defaults>
</compile_context>

<pallas_src>
import functools

import jax
import jax.numpy as jnp
from jax.experimental import pallas as pl
from jax.experimental.pallas import tpu as pltpu

PI = 3.141592653589793


def _rotate_kernel(head_ref, rel_ref, tail_ref, out_ref,
                   *, mode, inv_phase_scale, margin, half_dim):
    D = half_dim
    head = head_ref[...]             # (TB, 1 or TN, 2D)
    rel = rel_ref[...]               # (TB, 1 or TN, D)
    tail = tail_ref[...]             # (TB, 1 or TN, 2D)

    # Split re/im halves in-kernel (lane slice; hidden under HBM-bound pipeline).
    re_head, im_head = head[..., :D], head[..., D:]
    re_tail, im_tail = tail[..., :D], tail[..., D:]

    # phase_relation = relation / (embedding_range / embedding_dim / pi)
    phase = rel * inv_phase_scale
    re_rel = jnp.cos(phase)
    im_rel = jnp.sin(phase)

    if mode == "head-batch":
        re_s = re_rel * re_tail + im_rel * im_tail - re_head
        im_s = re_rel * im_tail - im_rel * re_tail - im_head
    else:  # 'tail-batch' / 'single'
        re_s = re_head * re_rel - im_head * im_rel - re_tail
        im_s = re_head * im_rel + im_head * re_rel - im_tail

    # |z| per complex component, then sum over D.
    mag = jnp.sqrt(re_s * re_s + im_s * im_s)          # (TB, TN, D)
    tb, tn, d = mag.shape
    mag2d = mag.reshape(tb * tn, d)                    # free: merges sublane dims
    ones = jnp.ones((d, 1), jnp.float32)
    # D-reduction on the MXU (frees the XLU; rows are independent, so padded
    # boundary rows never contaminate valid ones).
    score = jnp.dot(mag2d, ones, preferred_element_type=jnp.float32)  # (TB*TN, 1)

    if margin is not None:
        score = margin - score

    out_ref[...] = score.reshape(out_ref.shape).astype(out_ref.dtype)


def _choose_tiles(B, N, bytes_per_n_row, tile_n=None, tile_b=None):
    """Pick (TB, TN) so one pipeline stage of N-wide blocks stays ~<= 8 MiB.

    With double buffering that keeps the working set well inside the scoped
    VMEM limit on every generation (v7x only has 64 MiB physical VMEM)."""
    budget = 8 * 1024 * 1024

    if tile_n is not None:
        tn = min(int(tile_n), N)
    elif N * bytes_per_n_row <= budget:
        tn = N
    else:
        tn = (budget // bytes_per_n_row) // 128 * 128
        tn = max(128, min(2048, tn))
    if tn != N and tn % 8 != 0:
        tn = N  # keep the (8,128) sublane tiling constraint satisfied

    if tile_b is not None:
        tb = max(1, min(int(tile_b), B))
        while B % tb != 0:
            tb -= 1
    else:
        tb = 1
        while tb < B and B % (2 * tb) == 0 and (2 * tb) * tn * bytes_per_n_row <= budget:
            tb *= 2
    return tb, tn


def rotate_forward(head, relation, tail, mode,
                   embedding_range=12.0, embedding_dim=32, margin=9.0,
                   tile_n=None, tile_b=None):
    """Pallas implementation of RotatE.forward."""
    B, Nh, two_d = head.shape
    _, Nr, D = relation.shape
    _, Nt, two_d_t = tail.shape
    assert two_d == 2 * D and two_d_t == 2 * D, "entity dim must be 2 * relation dim"

    N = max(Nh, Nr, Nt)
    for name, n in (("head", Nh), ("relation", Nr), ("tail", Nt)):
        if n not in (1, N):
            raise ValueError(f"{name} has {n} rows along dim 1; expected 1 or {N}")

    # Bytes of N-wide operand data per broadcast row (drives the tile choice).
    bytes_per_n_row = 4 * ((2 * D if (Nh == N and N > 1) else 0)
                           + (D if (Nr == N and N > 1) else 0)
                           + (2 * D if (Nt == N and N > 1) else 0))
    bytes_per_n_row = max(bytes_per_n_row, 4 * D)

    TB, TN = _choose_tiles(B, N, bytes_per_n_row, tile_n=tile_n, tile_b=tile_b)
    grid = (B // TB, pl.cdiv(N, TN))

    def spec_for(n_rows, width):
        if n_rows == 1:
            # Broadcast operand: block index independent of the N-tile index,
            # so it is fetched once per batch block and reused across N tiles.
            return pl.BlockSpec((TB, 1, width), lambda bi, ni: (bi, 0, 0))
        return pl.BlockSpec((TB, TN, width), lambda bi, ni: (bi, ni, 0))

    inv_phase_scale = float(PI * embedding_dim / embedding_range)
    kernel = functools.partial(
        _rotate_kernel,
        mode=mode,
        inv_phase_scale=inv_phase_scale,
        margin=float(margin) if margin is not None else None,
        half_dim=D,
    )

    out = pl.pallas_call(
        kernel,
        out_shape=jax.ShapeDtypeStruct((B, N, 1), jnp.float32),
        grid=grid,
        in_specs=[spec_for(Nh, 2 * D), spec_for(Nr, D), spec_for(Nt, 2 * D)],
        out_specs=pl.BlockSpec((TB, TN, 1), lambda bi, ni: (bi, ni, 0)),
        compiler_params=pltpu.CompilerParams(
            dimension_semantics=("parallel", "parallel"),
            vmem_limit_bytes=32 * 1024 * 1024,
        ),
    )(head, relation, tail)

    return out.reshape(B, N)


def rotate_reference(head, relation, tail, mode,
                     embedding_range=12.0, embedding_dim=32, margin=9.0):
    """Pure-JAX reference mirroring the PyTorch module."""
    D = relation.shape[-1]
    re_head, im_head = head[..., :D], head[..., D:]
    re_tail, im_tail = tail[..., :D], tail[..., D:]
    phase = relation / (embedding_range / embedding_dim / PI)
    re_rel, im_rel = jnp.cos(phase), jnp.sin(phase)
    if mode == "head-batch":
        re_s = re_rel * re_tail + im_rel * im_tail - re_head
        im_s = re_rel * im_tail - im_rel * re_tail - im_head
    else:
        re_s = re_head * re_rel - im_head * im_rel - re_tail
        im_s = re_head * im_rel + im_head * re_rel - im_tail
    score = jnp.sqrt(re_s ** 2 + im_s ** 2).sum(axis=2)
    return margin - score if margin is not None else score


if __name__ == "__main__":
    embedding_range, embedding_dim, margin = 12.0, 32, 9.0
    B, N, D = 2, 8, 32

    key = jax.random.PRNGKey(0)
    k1, k2, k3, k4, k5, k6, k7 = jax.random.split(key, 7)

    # tail-batch: one (head, relation) per query, N candidate tails
    head_tb = jax.random.uniform(k1, (B, 1, 2 * D), jnp.float32, -0.5, 0.5)
    rel_tb = jax.random.uniform(k2, (B, 1, D), jnp.float32, -0.5, 0.5)
    tail_tb = jax.random.uniform(k3, (B, N, 2 * D), jnp.float32, -0.5, 0.5)

    # head-batch: N candidate heads, one (relation, tail) per query
    head_hb = jax.random.uniform(k4, (B, N, 2 * D), jnp.float32, -0.5, 0.5)
    tail_hb = jax.random.uniform(k5, (B, 1, 2 * D), jnp.float32, -0.5, 0.5)

    # larger-N tail-batch to exercise the N-tiled / broadcast-reuse pipeline
    N_big = 256
    tail_big = jax.random.uniform(k6, (B, N_big, 2 * D), jnp.float32, -0.5, 0.5)

    # 'single' mode: one triple per query
    tail_single = jax.random.uniform(k7, (B, 1, 2 * D), jnp.float32, -0.5, 0.5)

    cases = (
        ("tail-batch", (head_tb, rel_tb, tail_tb), {}),
        ("head-batch", (head_hb, rel_tb, tail_hb), {}),
        ("tail-batch", (head_tb, rel_tb, tail_big), {"tile_n": 128}),
        ("single", (head_tb, rel_tb, tail_single), {}),
    )

    ok = True
    for mode, (h, r, t), kwargs in cases:
        out = rotate_forward(h, r, t, mode, embedding_range, embedding_dim, margin, **kwargs)
        out = jax.block_until_ready(out)
        ref = rotate_reference(h, r, t, mode, embedding_range, embedding_dim, margin)
        n_exp = max(h.shape[1], r.shape[1], t.shape[1])
        if out.shape != (B, n_exp) or not jnp.allclose(out, ref, atol=1e-4, rtol=1e-4):
            ok = False
            print(f"MISMATCH mode={mode} shape={out.shape} "
                  f"max_err={float(jnp.max(jnp.abs(out - ref)))}")

    if ok:
        print("KERNEL_OK")
</pallas_src>

<mosaic_0001>
module attributes {stable_mosaic.version = 11 : i64} {
  func.func @_rotate_kernel(%arg0: i32, %arg1: i32, %arg2: memref<2x1x64xf32, #tpu.memory_space<vmem>>, %arg3: memref<2x1x32xf32, #tpu.memory_space<vmem>>, %arg4: memref<2x8x64xf32, #tpu.memory_space<vmem>>, %arg5: memref<2x8x1xf32, #tpu.memory_space<vmem>>) attributes {dimension_semantics = [#tpu.dimension_semantics<parallel>, #tpu.dimension_semantics<parallel>], iteration_bounds = array<i64: 1, 1>, scalar_prefetch = 0 : i64, scratch_operands = 0 : i64, tpu.core_type = #tpu.core_type<tc>, window_params = [{transform_indices = @transform_0, window_bounds = array<i64: 2, 1, 64>}, {transform_indices = @transform_1, window_bounds = array<i64: 2, 1, 32>}, {transform_indices = @transform_2, window_bounds = array<i64: 2, 8, 64>}, {transform_indices = @transform_3, window_bounds = array<i64: 2, 8, 1>}]} {
    %c0 = arith.constant 0 : index
    %c0_0 = arith.constant 0 : index
    %c0_1 = arith.constant 0 : index
    %0 = vector.load %arg2[%c0, %c0_0, %c0_1] : memref<2x1x64xf32, #tpu.memory_space<vmem>>, vector<2x1x64xf32>
    %c0_2 = arith.constant 0 : index
    %c0_3 = arith.constant 0 : index
    %c0_4 = arith.constant 0 : index
    %1 = vector.load %arg3[%c0_2, %c0_3, %c0_4] : memref<2x1x32xf32, #tpu.memory_space<vmem>>, vector<2x1x32xf32>
    %c0_5 = arith.constant 0 : index
    %c0_6 = arith.constant 0 : index
    %c0_7 = arith.constant 0 : index
    %2 = vector.load %arg4[%c0_5, %c0_6, %c0_7] : memref<2x8x64xf32, #tpu.memory_space<vmem>>, vector<2x8x64xf32>
    %3 = vector.extract_strided_slice %0 {offsets = [0, 0, 0], sizes = [2, 1, 32], strides = [1, 1, 1]} : vector<2x1x64xf32> to vector<2x1x32xf32>
    %4 = vector.extract_strided_slice %0 {offsets = [0, 0, 32], sizes = [2, 1, 32], strides = [1, 1, 1]} : vector<2x1x64xf32> to vector<2x1x32xf32>
    %5 = vector.extract_strided_slice %2 {offsets = [0, 0, 0], sizes = [2, 8, 32], strides = [1, 1, 1]} : vector<2x8x64xf32> to vector<2x8x32xf32>
    %6 = vector.extract_strided_slice %2 {offsets = [0, 0, 32], sizes = [2, 8, 32], strides = [1, 1, 1]} : vector<2x8x64xf32> to vector<2x8x32xf32>
    %cst = arith.constant 8.37758064 : f32
    %7 = vector.broadcast %cst : f32 to vector<2x1x32xf32>
    %8 = arith.mulf %1, %7 : vector<2x1x32xf32>
    %9 = math.cos %8 : vector<2x1x32xf32>
    %10 = math.sin %8 : vector<2x1x32xf32>
    %11 = arith.mulf %3, %9 : vector<2x1x32xf32>
    %12 = arith.mulf %4, %10 : vector<2x1x32xf32>
    %13 = arith.subf %11, %12 : vector<2x1x32xf32>
    %14 = vector.broadcast %13 : vector<2x1x32xf32> to vector<2x8x32xf32>
    %15 = arith.subf %14, %5 : vector<2x8x32xf32>
    %16 = arith.mulf %3, %10 : vector<2x1x32xf32>
    %17 = arith.mulf %4, %9 : vector<2x1x32xf32>
    %18 = arith.addf %16, %17 : vector<2x1x32xf32>
    %19 = vector.broadcast %18 : vector<2x1x32xf32> to vector<2x8x32xf32>
    %20 = arith.subf %19, %6 : vector<2x8x32xf32>
    %21 = arith.mulf %15, %15 : vector<2x8x32xf32>
    %22 = arith.mulf %20, %20 : vector<2x8x32xf32>
    %23 = arith.addf %21, %22 : vector<2x8x32xf32>
    %24 = math.sqrt %23 : vector<2x8x32xf32>
    %25 = vector.shape_cast %24 : vector<2x8x32xf32> to vector<16x32xf32>
    %cst_8 = arith.constant 1.000000e+00 : f32
    %26 = vector.broadcast %cst_8 : f32 to vector<32x1xf32>
    %cst_9 = arith.constant dense<0.000000e+00> : vector<16x1xf32>
    %27 = tpu.matmul %25, %26, %cst_9 {dimension_numbers = #tpu.dot_dimension_numbers<[1], [0], [0], [1], [0, 0, 1, 1], [], []>} : vector<16x32xf32>, vector<32x1xf32>, vector<16x1xf32> -> vector<16x1xf32>
    %cst_10 = arith.constant 9.000000e+00 : f32
    %28 = vector.broadcast %cst_10 : f32 to vector<16x1xf32>
    %29 = arith.subf %28, %27 : vector<16x1xf32>
    %30 = vector.shape_cast %29 : vector<16x1xf32> to vector<2x8x1xf32>
    %c0_11 = arith.constant 0 : index
    %c0_12 = arith.constant 0 : index
    %c0_13 = arith.constant 0 : index
    %31 = vector.load %arg5[%c0_11, %c0_12, %c0_13] : memref<2x8x1xf32, #tpu.memory_space<vmem>>, vector<2x8x1xf32>
    tpu.vector_store %arg5[%c0_11, %c0_12, %c0_13], %30 {strides = array<i32>} : memref<2x8x1xf32, #tpu.memory_space<vmem>>, vector<2x8x1xf32>,
    return
  }
  func.func @transform_0(%arg0: i32, %arg1: i32) -> (i32, i32, i32) {
    %c0_i32 = arith.constant 0 : i32
    %c0_i32_0 = arith.constant 0 : i32
    %c0_i32_1 = arith.constant 0 : i32
    return %arg0, %c0_i32, %c0_i32_0 : i32, i32, i32
  }
  func.func @transform_1(%arg0: i32, %arg1: i32) -> (i32, i32, i32) {
    %c0_i32 = arith.constant 0 : i32
    %c0_i32_0 = arith.constant 0 : i32
    %c0_i32_1 = arith.constant 0 : i32
    return %arg0, %c0_i32, %c0_i32_0 : i32, i32, i32
  }
  func.func @transform_2(%arg0: i32, %arg1: i32) -> (i32, i32, i32) {
    %c0_i32 = arith.constant 0 : i32
    %c0_i32_0 = arith.constant 0 : i32
    return %arg0, %arg1, %c0_i32 : i32, i32, i32
  }
  func.func @transform_3(%arg0: i32, %arg1: i32) -> (i32, i32, i32) {
    %c0_i32 = arith.constant 0 : i32
    %c0_i32_0 = arith.constant 0 : i32
    return %arg0, %arg1, %c0_i32 : i32, i32, i32
  }
}

</mosaic_0001>

<bundles_post_ra>
// kernel: tpu_custom_call.1
= control target key start
LH: loop header
LB: loop body
LE: loop exit
PB: predicated region body
PF: predicated region fallthrough
CT: control target
= control target key end

     0   :  { %8 = vsyncpa [#allocation3], 0  ;;  %s920_s0 = inlined_call_operand.hbm [shape: f32[2,1,64], index: 0, kind: input, shape index: {}]   ;;  %s921_s1 = inlined_call_operand.vmem [shape: f32[2,1,32], index: 1, kind: input, shape index: {}]   ;;  %s922_s2 = inlined_call_operand.hbm [shape: f32[2,8,64], index: 2, kind: input, shape index: {}]   ;;  %s923_s3 = inlined_call_operand.vmem [shape: f32[2,8,1], index: 3, kind: output, shape index: {}]  }
   0x1   :  { %9 = vsyncpa [#allocation5], 0  ;;  %s779_s12 = smov [#allocation2]   ;;  %s731_s16 = scalar_lea.hbm %s920_s0, 32 }
   0x2   :  { %s15_s13 = sshll.u32 %s779_s12, 4  ;;  %p732_p0 = scmp.ne.s32.totalorder %s920_s0, %s731_s16  ;;  %s16_s13 = int_to_ptr.vmem [resolvable:$true] %s15_s13 }
   0x3   :  { %p735_p1 = scmp.lt.u32.totalorder %s731_s16, %s920_s0 }
   0x5   :  { %p737_p2 = pnand %p735_p1, %p732_p0 }
   0x7   :  { %740 = shalt.err (!%p737_p2)
}
   0x8   :  { %s741_s21 = scalar_lea.vmem %s16_s13, 32  ;;  %p746_p4 = scmp.lt.s32.totalorder %s16_s13, %s16_s13 }
   0x9   :  { %p742_p3 = scmp.ne.s32.totalorder %s16_s13, %s741_s21  ;;  %p747_p5 = scmp.lt.s32.totalorder %s741_s21, %s741_s21 }
   0xb   :  { %p748_p6 = por %p747_p5, %p746_p4 }
   0xd   :  { %p749_p7 = pnand %p748_p6, %p742_p3 }
   0xf   :  { %752 = shalt.err (!%p749_p7)
}
  0x10   :  { %s780_s22 = smov 16   ;;  %s781_s23 = smov 1  }
  0x11   :  { %21 = dma.hbm_to_vmem [thread:$0]  %s920_s0, 32, %s16_s13, [#allocation3], %s780_s22, %s780_s22, %s781_s23  }
  0x12   :  { %s782_s26 = smov [#allocation4]   ;;  %s753_s30 = scalar_lea.hbm %s922_s2, 256 }
  0x13   :  { %s29_s27 = sshll.u32 %s782_s26, 4  ;;  %p754_p8 = scmp.ne.s32.totalorder %s922_s2, %s753_s30  ;;  %s30_s27 = int_to_ptr.vmem [resolvable:$true] %s29_s27 }
  0x14   :  { %p757_p9 = scmp.lt.u32.totalorder %s753_s30, %s922_s2 }
  0x16   :  { %p759_p10 = pnand %p757_p9, %p754_p8 }
  0x18   :  { %762 = shalt.err (!%p759_p10)
}
  0x19   :  { %s763_s8 = scalar_lea.vmem %s30_s27, 256  ;;  %p768_p12 = scmp.lt.s32.totalorder %s30_s27, %s30_s27 }
  0x1a   :  { %p764_p11 = scmp.ne.s32.totalorder %s30_s27, %s763_s8  ;;  %p769_p13 = scmp.lt.s32.totalorder %s763_s8, %s763_s8 }
  0x1c   :  { %p770_p0 = por %p769_p13, %p768_p12 }
  0x1e   :  { %p771_p1 = pnand %p770_p0, %p764_p11 }
  0x20   :  { %774 = shalt.err (!%p771_p1)
}
  0x21   :  { %s783_s0 = smov 128   ;;  %s784_s9 = smov 8  }
  0x22   :  { %35 = dma.hbm_to_vmem [thread:$0]  %s922_s2, 256, %s30_s27, [#allocation5], %s783_s0, %s783_s0, %s784_s9  }
  0x23   :  { %775 = dma.done.wait [#allocation3], 32  }
  0x24   :  { %776 = vsyncadd [#allocation3], 4294967264 }
  0x25   :  { %777 = dma.done.wait [#allocation5], 256  }
  0x26   :  { %778 = vsyncadd [#allocation5], 4294967040  ;;  %v44_v0 = vld [vmem:[%s921_s1] sm:$0x1]  ;;  %v45_v1 = vld [vmem:[%s921_s1 + $0x1] sm:$0x1] }
  0x27   :  { %v844_v2 = vmul.f32 8.377581, %v44_v0  ;;  %v846_v3 = vmul.f32 8.377581, %v45_v1  ;;  %v785_v26 = vmov 683565275  }
  0x28   :  { %v786_v28 = vmov 2475754826   ;;  %v787_v30 = vmov 2131351028   ;;  %v788_v32 = vmov 2102212464  }
  0x29   :  { %v50_v4 = vand.u32 2147483647, %v844_v2  ;;  %v53_v5 = vand.u32 2139095040, %v844_v2  ;;  %v153_v6 = vand.u32 2147483647, %v846_v3  ;;  %v156_v7 = vand.u32 2139095040, %v846_v3 }
  0x2a   :  { %v789_v34 = vmov 920167782   ;;  %v790_v42 = vmov 1326507024   ;;  %vm52_vm14 = vcmp.lt.s32.totalorder %v844_v2, 0  ;;  %s791_s1 = smov 32  }
  0x2b   :  { %v54_v8 = vshrl.u32 %v53_v5, 23  ;;  %v57_v9 = vand.u32 8388607, %v50_v4  ;;  %v157_v10 = vshrl.u32 %v156_v7, 23  ;;  %v160_v11 = vand.u32 8388607, %v153_v6 }
  0x2c   :  { %vm51_vm15 = vcmp.le.f32.partialorder %v50_v4, 0.7853982  ;;  %s792_s2 = smov 96  }
  0x2d   :  { %v657_v12 = vadd.s32 4294967169, %v54_v8  ;;  %v661_v13 = vadd.s32 4294967169, %v157_v10  ;;  %v58_v15 = vor.u32 8388608, %v57_v9  ;;  %v161_v16 = vor.u32 8388608, %v160_v11 }
  0x2f   :  { %v60_v14 = vadd.s32 1, %v657_v12  ;;  %v163_v17 = vadd.s32 1, %v661_v13  ;;  %v856_v22 = vshll.u32 %v58_v15, 8  ;;  %v858_v24 = vshll.u32 %v161_v16, 8 }
  0x31   :  { %vm61_vm0 = vcmp.gt.s32.totalorder %v60_v14, 0  ;;  %vm164_vm1 = vcmp.gt.s32.totalorder %v163_v17, 0 }
  0x32   :  { %v62_v18 = vsel %vm61_vm0, %v60_v14, 0  ;;  %v165_v21 = vsel %vm164_vm1, %v163_v17, 0  ;;  %vm155_vm0 = vcmp.lt.s32.totalorder %v846_v3, 0  ;;  %vm154_vm1 = vcmp.le.f32.partialorder %v153_v6, 0.7853982 }
  0x33   :  { %v63_v19 = vshrl.u32 %v62_v18, 5  ;;  %v64_v20 = vand.u32 31, %v62_v18  ;;  %v167_v23 = vand.u32 31, %v165_v21  ;;  %v860_v36 = vshrl.u32 %v165_v21, 5 }
  0x35   :  { %v65_v25 = vsub.s32 32, %v64_v20  ;;  %v67_v27 = vshll.u32 %v785_v26, %v64_v20  ;;  %v70_v29 = vshll.u32 %v786_v28, %v64_v20  ;;  %v73_v31 = vshll.u32 %v787_v30, %v64_v20 }
  0x36   :  { %v76_v33 = vshll.u32 %v788_v32, %v64_v20  ;;  %v79_v35 = vshll.u32 %v789_v34, %v64_v20  ;;  %vm82_vm2 = vcmp.lt.s32.totalorder %v63_v19, 1  ;;  %vm83_vm3 = vcmp.lt.s32.totalorder %v63_v19, 2 }
  0x37   :  { %v66_v37 = vshrl.u32 %v785_v26, %v65_v25  ;;  %v68_v38 = vshrl.u32 %v786_v28, %v65_v25  ;;  %v71_v39 = vshrl.u32 %v787_v30, %v65_v25  ;;  %v74_v40 = vshrl.u32 %v788_v32, %v65_v25 }
  0x38   :  { %v77_v41 = vshrl.u32 %v789_v34, %v65_v25  ;;  %v80_v43 = vshrl.u32 %v790_v42, %v65_v25  ;;  %vm85_vm4 = vcmp.lt.s32.totalorder %v63_v19, 4  ;;  %v168_v47 = vsub.s32 32, %v167_v23 }
  0x39   :  { %v69_v44 = vor.u32 %v68_v38, %v67_v27  ;;  %v72_v45 = vor.u32 %v71_v39, %v70_v29  ;;  %v75_v46 = vor.u32 %v74_v40, %v73_v31  ;;  %vm84_vm5 = vcmp.lt.s32.totalorder %v63_v19, 3 }
  0x3a   :  { %v78_v48 = vor.u32 %v77_v41, %v76_v33  ;;  %v81_v49 = vor.u32 %v80_v43, %v79_v35  ;;  %v170_v50 = vshll.u32 %v785_v26, %v167_v23  ;;  %v173_v58 = vshll.u32 %v786_v28, %v167_v23 }
  0x3b   :  { %v86_v51 = vsel %vm82_vm2, %v66_v37, %v69_v44  ;;  %v87_v52 = vsel %vm85_vm4, %v75_v46, 2102212464  ;;  %v90_v53 = vsel %vm82_vm2, %v69_v44, %v72_v45  ;;  %v94_v54 = vsel %vm82_vm2, %v72_v45, %v75_v46 }
  0x3c   :  { %v88_v55 = vsel %vm84_vm5, %v72_v45, %v87_v52  ;;  %v91_v56 = vsel %vm85_vm4, %v78_v48, 920167782  ;;  %v95_v57 = vsel %vm85_vm4, %v81_v49, 1326507024  ;;  %v169_v61 = vshrl.u32 %v785_v26, %v168_v47 }
  0x3d   :  { %v92_v59 = vsel %vm84_vm5, %v75_v46, %v91_v56  ;;  %v96_v60 = vsel %vm84_vm5, %v78_v48, %v95_v57  ;;  %v171_v62 = vshrl.u32 %v786_v28, %v168_v47  ;;  %v89_v63 = vsel %vm83_vm3, %v86_v51, %v88_v55 }
  0x3e   :  { %v93_v0 = vsel %vm83_vm3, %v90_v53, %v92_v59  ;;  %v97_v1 = vsel %vm83_vm3, %v94_v54, %v96_v60  ;;  %v174_v5 = vshrl.u32 %v787_v30, %v168_v47  ;;  %v176_v13 = vshll.u32 %v787_v30, %v167_v23 }
  0x3f   :  { %v869_v7 = vmul.u32.u64.low %v856_v22, %v97_v1  ;;  %v870_v8 = vmul.u32.u64.high %v856_v22, %v97_v1, %v869_v7  ;;  %v873_v9 = vmul.u32.u64.low %v856_v22, %v93_v0  ;;  %v874_v10 = vmul.u32.u64.high %v856_v22, %v93_v0, %v873_v9 }
  0x40   :  { %v172_v11 = vor.u32 %v171_v62, %v170_v50  ;;  %v175_v12 = vor.u32 %v174_v5, %v173_v58  ;;  %v177_v14 = vshrl.u32 %v788_v32, %v168_v47  ;;  %v179_v15 = vshll.u32 %v788_v32, %v167_v23 }
  0x41   :  { %v180_v16 = vshrl.u32 %v789_v34, %v168_v47  ;;  %v182_v17 = vshll.u32 %v789_v34, %v167_v23  ;;  %v183_v18 = vshrl.u32 %v790_v42, %v168_v47  ;;  %v105_v19 = vmul.u32 %v856_v22, %v89_v63 }
  0x42   :  { %v178_v20 = vor.u32 %v177_v14, %v176_v13  ;;  %vm185_vm6 = vcmp.lt.s32.totalorder %v860_v36, 1  ;;  %vm186_vm7 = vcmp.lt.s32.totalorder %v860_v36, 2  ;;  %vm107_vm8 = vc.u32 %v870_v8, %v873_v9 }
  0x43   :  { %v108_v21 = vadd.s32 1, %v874_v10  ;;  %v181_v25 = vor.u32 %v180_v16, %v179_v15  ;;  %vm187_vm9 = vcmp.lt.s32.totalorder %v860_v36, 3  ;;  %v184_v26 = vor.u32 %v183_v18, %v182_v17 }
  0x44   :  { %vm188_vm10 = vcmp.lt.s32.totalorder %v860_v36, 4  ;;  %v189_v27 = vsel %vm185_vm6, %v169_v61, %v172_v11  ;;  %v193_v23 = vsel %vm185_vm6, %v172_v11, %v175_v12  ;;  %v197_v30 = vsel %vm185_vm6, %v175_v12, %v178_v20 }
  0x45   :  { %v109_v28 = vsel %vm107_vm8, %v108_v21, %v874_v10  ;;  %v190_v22 = vsel %vm188_vm10, %v178_v20, 2102212464  ;;  %v194_v29 = vsel %vm188_vm10, %v181_v25, 920167782  ;;  %v198_v34 = vsel %vm188_vm10, %v184_v26, 1326507024 }
  0x46   :  { %v110_v31 = vadd.s32 %v109_v28, %v105_v19  ;;  %v191_v32 = vsel %vm187_vm9, %v175_v12, %v190_v22  ;;  %v195_v33 = vsel %vm187_vm9, %v178_v20, %v194_v29  ;;  %v199_v38 = vsel %vm187_vm9, %v181_v25, %v198_v34 }
  0x47   :  { %v192_v35 = vsel %vm186_vm7, %v189_v27, %v191_v32  ;;  %v196_v37 = vsel %vm186_vm7, %v193_v23, %v195_v33  ;;  %v200_v40 = vsel %vm186_vm7, %v197_v30, %v199_v38  ;;  %v106_v59 = vadd.s32 %v873_v9, %v870_v8 }
  0x48   :  { %v111_v39 = vadd.s32 536870912, %v110_v31  ;;  %v891_v41 = vmul.u32.u64.low %v858_v24, %v196_v37  ;;  %v892_v42 = vmul.u32.u64.high %v858_v24, %v196_v37, %v891_v41  ;;  %v208_v46 = vmul.u32 %v858_v24, %v192_v35 }
  0x49   :  { %v895_v43 = vmul.u32.u64.low %v858_v24, %v200_v40  ;;  %v896_v44 = vmul.u32.u64.high %v858_v24, %v200_v40, %v895_v43  ;;  %vm142_vm8 = vweird.f32 %v844_v2 }
  0x4a   :  { %v112_v45 = vshrl.u32 %v111_v39, 30  ;;  %v211_v48 = vadd.s32 1, %v892_v42 }
  0x4b   :  { %vm210_vm11 = vc.u32 %v896_v44, %v891_v41  ;;  %v209_v15 = vadd.s32 %v891_v41, %v896_v44 }
  0x4c   :  { %v113_v47 = vshll.u32 %v112_v45, 30  ;;  %v212_v36 = vsel %vm210_vm11, %v211_v48, %v892_v42  ;;  %v136_v8 = vsub.s32 4, %v112_v45 }
  0x4d   :  { %v213_v50 = vadd.s32 %v212_v36, %v208_v46 }
  0x4e   :  { %v114_v49 = vsub.s32 %v110_v31, %v113_v47  ;;  %v137_v27 = vsel %vm52_vm14, %v136_v8, %v112_v45  ;;  %v46_v8 = vld [vmem:[#allocation4] sm:$0xff] }
  0x4f   :  { %v214_v52 = vadd.s32 536870912, %v213_v50  ;;  %v139_v30 = vsel %vm51_vm15, 0, %v137_v27 }
  0x50   :  { %v116_v51 = vsub.s32 0, %v114_v49  ;;  %v349_v35 = vadd.s32 3, %v139_v30  ;;  %v143_v40 = vand.u32 3, %v139_v30 }
  0x51   :  { %v215_v54 = vshrl.u32 %v214_v52, 30 }
  0x52   :  { %v658_v53 = vmin.u32 %v116_v51, %v114_v49  ;;  %v350_v39 = vand.u32 3, %v349_v35  ;;  %vm148_vm3 = vcmp.eq.s32.totalorder %v143_v40, 2  ;;  %vm145_vm5 = vcmp.eq.s32.totalorder %v143_v40, 0 }
  0x53   :  { %v216_v56 = vshll.u32 %v215_v54, 30  ;;  %v239_v34 = vsub.s32 4, %v215_v54  ;;  %vm144_vm7 = vcmp.lt.s32.totalorder %v143_v40, 2 }
  0x54   :  { %v118_v55 = vclz %v658_v53  ;;  %vm355_vm2 = vcmp.eq.s32.totalorder %v350_v39, 2  ;;  %vm352_vm4 = vcmp.eq.s32.totalorder %v350_v39, 0  ;;  %vm351_vm6 = vcmp.lt.s32.totalorder %v350_v39, 2 }
  0x55   :  { %v217_v58 = vsub.s32 %v213_v50, %v216_v56  ;;  %v240_v38 = vsel %vm155_vm0, %v239_v34, %v215_v54 }
  0x56   :  { %v659_v57 = vadd.s32 4294967294, %v118_v55  ;;  %v242_v43 = vsel %vm154_vm1, 0, %v240_v38 }
  0x57   :  { %v219_v60 = vsub.s32 0, %v217_v58  ;;  %v453_v47 = vadd.s32 3, %v242_v43  ;;  %v246_v54 = vand.u32 3, %v242_v43 }
  0x58   :  { %vm660_vm12 = vcmp.lt.s32.totalorder %v659_v57, 0 }
  0x59   :  { %v121_v24 = vsel %vm660_vm12, 0, %v659_v57  ;;  %v662_v0 = vmin.u32 %v219_v60, %v217_v58  ;;  %v454_v52 = vand.u32 3, %v453_v47  ;;  %vm251_vm10 = vcmp.eq.s32.totalorder %v246_v54, 2 }
  0x5a   :  { %v122_v61 = vsub.s32 32, %v121_v24  ;;  %v123_v62 = vshll.u32 %v114_v49, %v121_v24  ;;  %v126_v63 = vsub.s32 4294967266, %v121_v24  ;;  %vm248_vm12 = vcmp.eq.s32.totalorder %v246_v54, 0 }
  0x5b   :  { %v221_v7 = vclz %v662_v0  ;;  %vm459_vm9 = vcmp.eq.s32.totalorder %v454_v52, 2  ;;  %vm456_vm11 = vcmp.eq.s32.totalorder %v454_v52, 0 }
  0x5c   :  { %v124_v1 = vshrl.u32 %v106_v59, %v122_v61  ;;  %v127_v5 = vadd.s32 127, %v126_v63 }
  0x5d   :  { %v663_v12 = vadd.s32 4294967294, %v221_v7  ;;  %v42_v7 = vld [vmem:[#allocation2] sm:$0x1] }
  0x5e   :  { %v125_v10 = vor.u32 %v124_v1, %v123_v62  ;;  %v128_v11 = vshll.u32 %v127_v5, 23 }
  0x5f   :  { %vm664_vm13 = vcmp.lt.s32.totalorder %v663_v12, 0 }
  0x60   :  { %v129_v13 = vor.u32 4788187, %v128_v11  ;;  %v132_v14 = vcvt.s32.f32 %v125_v10  ;;  %v224_v9 = vsel %vm664_vm13, 0, %v663_v12  ;;  %vm455_vm13 = vcmp.lt.s32.totalorder %v454_v52, 2 }
  0x61   :  { %v225_v17 = vsub.s32 32, %v224_v9  ;;  %v226_v18 = vshll.u32 %v217_v58, %v224_v9  ;;  %v229_v19 = vsub.s32 4294967266, %v224_v9 }
  0x62   :  { %v130_v16 = vand.u32 2147483647, %v129_v13 }
  0x63   :  { %v227_v21 = vshrl.u32 %v209_v15, %v225_v17  ;;  %v230_v25 = vadd.s32 127, %v229_v19  ;;  %v793_v17 = vmov 1.0|1.0   ;;  %v488_v19 = vlaneseq }
  0x64   :  { %v133_v20 = vmul.f32 %v132_v14, %v130_v16  ;;  %v43_v14 = vld [vmem:[#allocation2 + $0x1] sm:$0x1]  ;;  %692 = vmatprep.subr.bf16.mxu0 %v793_v17 }
  0x65   :  { %v228_v23 = vor.u32 %v227_v21, %v226_v18  ;;  %v231_v28 = vshll.u32 %v230_v25, 23  ;;  %693 = vmatpush3.bf16.msra.mxu0 %v793_v17  ;;  %v47_v18 = vld [vmem:[#allocation4 + $0x8] sm:$0xff] }
  0x66   :  { %v134_v26 = vxor.u32 2147483648, %v133_v20  ;;  %694 = vmatprep.subr.bf16.mxu0 %v793_v17 }
  0x67   :  { %v232_v31 = vor.u32 4788187, %v231_v28  ;;  %v235_v32 = vcvt.s32.f32 %v228_v23 }
  0x68   :  { %v135_v22 = vsel %vm52_vm14, %v134_v26, %v133_v20  ;;  %vm247_vm14 = vcmp.lt.s32.totalorder %v246_v54, 2  ;;  %v489_v20 = vshrl.u32 %v488_v19, 7 }
  0x69   :  { %v138_v29 = vsel %vm51_vm15, %v844_v2, %v135_v22  ;;  %v233_v33 = vand.u32 2147483647, %v232_v31  ;;  %vm245_vm15 = vweird.f32 %v846_v3  ;;  %695 = vmatpush3.bf16.msra.mxu0 %v793_v17 }
  0x6a   :  { %719 = vcosq.f32 %v138_v29  ;;  %v490_v27 = vsub.s32 0, %v489_v20 }
  0x6b   :  { %721 = vsinq.f32 %v138_v29  ;;  %v236_v37 = vmul.f32 %v235_v32, %v233_v33 }
  0x6d   :  { %v237_v4 = vxor.u32 2147483648, %v236_v37 }
  0x6f   :  { %v238_v41 = vsel %vm155_vm0, %v237_v4, %v236_v37 }
  0x70   :  { %v241_v42 = vsel %vm154_vm1, %v846_v3, %v238_v41  ;;  %vm564_vm1 = vcmask 261120  }
  0x71   :  { %723 = vcosq.f32 %v241_v42 }
  0x72   :  { %725 = vsinq.f32 %v241_v42 }
  0x74   :  { %v720_v44 = vpop.eup %719 }
  0x75   :  { %v722_v45 = vpop.eup %721  ;;  %v149_v46 = vxor.u32 2147483648, %v720_v44 }
  0x76   :  { %v146_v48 = vxor.u32 2147483648, %v722_v45 }
  0x77   :  { %v357_v6 = vsel %vm355_vm2, %v149_v46, %v722_v45  ;;  %v150_v49 = vsel %vm148_vm3, %v149_v46, %v722_v45 }
  0x78   :  { %v354_v36 = vsel %vm352_vm4, %v720_v44, %v146_v48  ;;  %v147_v50 = vsel %vm145_vm5, %v720_v44, %v146_v48  ;;  %vm648_vm5 = vcmask 7168  }
  0x79   :  { %v358_v51 = vsel %vm351_vm6, %v354_v36, %v357_v6  ;;  %v151_v53 = vsel %vm144_vm7, %v147_v50, %v150_v49 }
  0x7a   :  { %v359_v55 = vsel %vm142_vm8, nan, %v358_v51  ;;  %v152_v56 = vsel %vm142_vm8, nan, %v151_v53 }
  0x7b   :  { %468 = vrot.lane.b32.xlu0 %v359_v55, %s791_s1  ;;  %v724_v57 = vpop.eup %723  ;;  %v464_v21 = vmul.f32 %v152_v56, %v42_v7  ;;  %v500_v26 = vmul.f32 %v359_v55, %v42_v7 }
  0x7c   :  { %v726_v58 = vpop.eup %725  ;;  %v252_v59 = vxor.u32 2147483648, %v724_v57 }
  0x7d   :  { %v249_v2 = vxor.u32 2147483648, %v726_v58 }
  0x7e   :  { %v461_v24 = vsel %vm459_vm9, %v252_v59, %v726_v58  ;;  %v253_v60 = vsel %vm251_vm10, %v252_v59, %v726_v58 }
  0x7f   :  { %504 = vrot.lane.b32.xlu0 %v152_v56, %s791_s1  ;;  %v458_v61 = vsel %vm456_vm11, %v724_v57, %v249_v2  ;;  %v250_v62 = vsel %vm248_vm12, %v724_v57, %v249_v2 }
  0x80   :  { %v462_v63 = vsel %vm455_vm13, %v458_v61, %v461_v24  ;;  %v254_v0 = vsel %vm247_vm14, %v250_v62, %v253_v60 }
  0x81   :  { %v463_v1 = vsel %vm245_vm15, nan, %v462_v63  ;;  %v255_v5 = vsel %vm245_vm15, nan, %v254_v0 }
  0x82   :  { %470 = vrot.lane.b32.xlu1 %v463_v1, %s791_s1  ;;  %v465_v29 = vmul.f32 %v255_v5, %v43_v14  ;;  %v501_v32 = vmul.f32 %v463_v1, %v43_v14 }
  0x86   :  { %506 = vrot.lane.b32.xlu1 %v255_v5, %s791_s1 }
  0xed   :  { %v469_v10 = vpop.permute.xlu0 %468 }
  0xee   :  { %v474_v11 = vmul.f32 %v469_v10, %v42_v7 }
  0xf0   :  { %478 = vrot.lane.b32.xlu0 %v474_v11, %s792_s2 }
  0xf1   :  { %v505_v12 = vpop.permute.xlu0 %504 }
  0xf2   :  { %v510_v13 = vmul.f32 %v505_v12, %v42_v7 }
  0xf4   :  { %514 = vrot.lane.b32.xlu1 %v510_v13, %s792_s2  ;;  %v471_v3 = vpop.permute.xlu1 %470 }
  0xf5   :  { %v475_v15 = vmul.f32 %v471_v3, %v43_v14 }
  0xf7   :  { %480 = vrot.lane.b32.xlu0 %v475_v15, %s792_s2 }
  0xf8   :  { %v507_v16 = vpop.permute.xlu1 %506 }
  0xf9   :  { %v511_v9 = vmul.f32 %v507_v16, %v43_v14 }
  0xfb   :  { %516 = vrot.lane.b32.xlu1 %v511_v9, %s792_s2  ;;  %536 = vrot.lane.b32.xlu0 %v46_v8, %s792_s2 }
  0xff   :  { %538 = vrot.lane.b32.xlu1 %v47_v18, %s792_s2 }
 0x162   :  { %v479_v25 = vpop.permute.xlu0 %478 }
 0x163   :  { %v484_v23 = vsub.f32 %v464_v21, %v479_v25 }
 0x165   :  { %v491_v30 = vrot.slane %v484_v23, %v490_v27 }
 0x166   :  { %v515_v28 = vpop.permute.xlu1 %514 }
 0x167   :  { %v520_v22 = vadd.f32 %v515_v28, %v500_v26  ;;  %v498_v35 = vsub.f32 %v491_v30, %v46_v8 }
 0x169   :  { %v481_v31 = vpop.permute.xlu0 %480  ;;  %v527_v34 = vrot.slane %v520_v22, %v490_v27  ;;  %v544_v42 = vmul.f32 %v498_v35, %v498_v35 }
 0x16a   :  { %v485_v33 = vsub.f32 %v465_v29, %v481_v31 }
 0x16c   :  { %v495_v37 = vrot.slane %v485_v33, %v490_v27 }
 0x16d   :  { %v517_v4 = vpop.permute.xlu1 %516  ;;  %v537_v38 = vpop.permute.xlu0 %536 }
 0x16e   :  { %v521_v39 = vadd.f32 %v517_v4, %v501_v32  ;;  %v542_v40 = vsub.f32 %v527_v34, %v537_v38  ;;  %v499_v41 = vsub.f32 %v495_v37, %v47_v18 }
 0x170   :  { %v546_v43 = vmul.f32 %v542_v40, %v542_v40  ;;  %v531_v44 = vrot.slane %v521_v39, %v490_v27  ;;  %v545_v48 = vmul.f32 %v499_v41, %v499_v41 }
 0x171   :  { %v539_v45 = vpop.permute.xlu1 %538 }
 0x172   :  { %v548_v46 = vadd.f32 %v546_v43, %v544_v42  ;;  %v543_v47 = vsub.f32 %v531_v44, %v539_v45 }
 0x174   :  { %v547_v6 = vmul.f32 %v543_v47, %v543_v47  ;;  %727 = vrsqrt.f32 %v548_v46  ;;  %vm552_vm0 = vcmp.eq.f32.partialorder %v548_v46, inf  ;;  %v555_v51 = vand.u32 2147483648, %v548_v46 }
 0x175   :  { %vm554_vm2 = vcmp.eq.f32.partialorder %v548_v46, 0.0 }
 0x176   :  { %v549_v49 = vadd.f32 %v547_v6, %v545_v48 }
 0x178   :  { %729 = vrsqrt.f32 %v549_v49  ;;  %vm559_vm3 = vcmp.eq.f32.partialorder %v549_v49, inf  ;;  %v562_v56 = vand.u32 2147483648, %v549_v49  ;;  %vm561_vm4 = vcmp.eq.f32.partialorder %v549_v49, 0.0 }
 0x17e   :  { %v728_v36 = vpop.eup %727 }
 0x17f   :  { %v551_v50 = vmul.f32 %v728_v36, %v548_v46 }
 0x181   :  { %v553_v52 = vsel %vm552_vm0, %v548_v46, %v551_v50 }
 0x182   :  { %v730_v53 = vpop.eup %729  ;;  %v556_v54 = vsel %vm554_vm2, %v555_v51, %v553_v52 }
 0x183   :  { %689 = vmatprep.mubr.msk.f32.mxu0 %vm564_vm1, %v556_v54  ;;  %v558_v55 = vmul.f32 %v730_v53, %v549_v49 }
 0x185   :  { %v560_v57 = vsel %vm559_vm3, %v549_v49, %v558_v55 }
 0x186   :  { %v563_v58 = vsel %vm561_vm4, %v562_v56, %v560_v57 }
 0x187   :  { %690 = vmatmul.mubr.msk.f32.vlgmr.msra.gmra.mrb[0].mxu0 %vm564_vm1, %v563_v58 }
 0x25a   :  { %v691_v59 = vpop.f32.mrb[0].mxu0 }
 0x25b   :  { %v647_v2 = vsub.f32 9.0, %v691_v59  ;;  %v637_v24 = vpop.f32.mrb[1].mxu0 }
 0x25c   :  { %v646_v60 = vsub.f32 9.0, %v637_v24 }
 0x25d   :  { %650 = vst.msk [vmem:[%s923_s3 + $0x8] sm:$0xff] %vm648_vm5, %v647_v2 }
 0x25e   :  { %649 = vst.msk [vmem:[%s923_s3] sm:$0xff] %vm648_vm5, %v646_v60 }
 0x25f   :  { %655 = vsyncpa [#allocation3], 1 }
 0x260   :  { %656 = vsyncpa [#allocation5], 1 }

</bundles_post_ra>
